<compile_context>
chip_gen: v6e
topology: v6e:2x2x1
jax: 0.10.0
libtpu: 0.0.40
codegen_flags: <defaults>
</compile_context>

<pallas_src>
import jax
import jax.numpy as jnp
from jax.experimental import pallas as pl
from jax.experimental.pallas import tpu as pltpu


def _mask_input_kernel(x_ref, m_ref, mf_ref, o_ref):
    # x_ref:  (TR, D)  input row tile
    # m_ref:  (TR, 1)  int8 mask tile (nonzero == masked)
    # mf_ref: (1, D)   mask feature vector (already in x dtype)
    # o_ref:  (TR, D)  output row tile
    mask = m_ref[...] != 0                      # (TR, 1) bool, broadcasts over D
    o_ref[...] = jnp.where(mask, mf_ref[...], x_ref[...])


def _pick_x_tile_bytes():
    """Per-generation x-tile budget + VMEM capacity (conservative fallback)."""
    try:
        info = pltpu.get_tpu_info()
        vmem_cap = int(getattr(info, "vmem_capacity_bytes", 128 << 20))
    except Exception:
        vmem_cap = 64 << 20  # conservative minimum across generations
    # v7x has 64 MiB VMEM/TC but 3.2 TB/s HBM -> larger tile amortizes the
    # fixed per-grid-step overhead; v5e/v6e stay at the ~85%-roofline 4 MiB.
    x_tile = (8 << 20) if vmem_cap <= (64 << 20) else (4 << 20)
    return x_tile, vmem_cap


def mask_input_layer(x, masked_position, mask_feature):
    """x: (B, T, D) float, masked_position: (B, T) bool, mask_feature: (D,)."""
    B, T, D = x.shape
    dtype = x.dtype
    dbytes = jnp.dtype(dtype).itemsize
    N = B * T

    # Row-major flatten: rows = (b, t), lanes = D.  Free reshapes (contiguous).
    x2 = x.reshape(N, D)
    m2 = masked_position.reshape(N, 1).astype(jnp.int8)
    mf = mask_feature.reshape(1, D).astype(dtype)

    x_tile_bytes, vmem_cap = _pick_x_tile_bytes()

    # Row tile: multiple of 32 so both the f32/bf16 x tile and the int8 mask
    # tile satisfy the sublane constraint when tr < N; a full-extent block
    # (tr == N) is always valid regardless of N.
    sub = 32
    target_rows = x_tile_bytes // max(1, D * dbytes)
    tr = max(sub, (target_rows // sub) * sub)
    if tr >= N:
        tr = N
    grid = (pl.cdiv(N, tr),)  # ragged last block is masked by Pallas — no pad/slice

    # Live VMEM: 2x double-buffered (x + out) tiles + mask tiles + mask_feature.
    x_block_bytes = tr * D * dbytes
    live_bytes = 4 * x_block_bytes + 4 * tr + 2 * D * dbytes
    vmem_limit = int(min(live_bytes + (8 << 20), vmem_cap))

    out2 = pl.pallas_call(
        _mask_input_kernel,
        out_shape=jax.ShapeDtypeStruct((N, D), dtype),
        grid_spec=pltpu.PrefetchScalarGridSpec(
            num_scalar_prefetch=0,
            grid=grid,
            in_specs=[
                pl.BlockSpec((tr, D), lambda r: (r, 0)),
                pl.BlockSpec((tr, 1), lambda r: (r, 0)),
                pl.BlockSpec((1, D), lambda r: (0, 0)),
            ],
            out_specs=pl.BlockSpec((tr, D), lambda r: (r, 0)),
        ),
        compiler_params=pltpu.CompilerParams(
            dimension_semantics=("parallel",),
            vmem_limit_bytes=vmem_limit,
        ),
        cost_estimate=pl.CostEstimate(
            flops=0,
            transcendentals=0,
            bytes_accessed=2 * N * D * dbytes + N + D * dbytes,
        ),
    )(x2, m2, mf)

    return out2.reshape(B, T, D)


if __name__ == "__main__":
    B, T, D = 2, 8, 32  # batch, seq, out_features (hidden)

    key = jax.random.PRNGKey(0)
    k_x, k_m, k_f = jax.random.split(key, 3)

    x = jax.random.normal(k_x, (B, T, D), dtype=jnp.float32)
    masked_position = jax.random.bernoulli(k_m, p=0.5, shape=(B, T))
    # Deterministic stand-in for torch.nn.Parameter(torch.empty(D).normal_())
    mask_feature = jax.random.normal(k_f, (D,), dtype=jnp.float32)

    out = mask_input_layer(x, masked_position, mask_feature)
    out = jax.block_until_ready(out)

    # Pure-JAX reference for sanity checking the kernel semantics.
    ref = jnp.where(masked_position[..., None], mask_feature[None, None, :], x)
    assert out.shape == (B, T, D)
    assert out.dtype == x.dtype
    assert jnp.allclose(out, ref, atol=1e-6), "kernel output mismatch vs reference"

    print("KERNEL_OK")
</pallas_src>

<mosaic_0001>
module attributes {stable_mosaic.version = 11 : i64} {
  func.func @_mask_input_kernel(%arg0: i32, %arg1: memref<16x32xf32, #tpu.memory_space<vmem>>, %arg2: memref<16x1xi8, #tpu.memory_space<vmem>>, %arg3: memref<1x32xf32, #tpu.memory_space<vmem>>, %arg4: memref<16x32xf32, #tpu.memory_space<vmem>>) attributes {dimension_semantics = [#tpu.dimension_semantics<parallel>], iteration_bounds = array<i64: 1>, scalar_prefetch = 0 : i64, scratch_operands = 0 : i64, tpu.core_type = #tpu.core_type<tc>, window_params = [{transform_indices = @transform_0, window_bounds = array<i64: 16, 32>}, {transform_indices = @transform_1, window_bounds = array<i64: 16, 1>}, {pipeline_mode = #tpu.pipeline_mode<synchronous>, transform_indices = @transform_2, window_bounds = array<i64: 1, 32>}, {transform_indices = @transform_3, window_bounds = array<i64: 16, 32>}]} {
    %c0 = arith.constant 0 : index
    %c0_0 = arith.constant 0 : index
    %0 = vector.load %arg2[%c0, %c0_0] : memref<16x1xi8, #tpu.memory_space<vmem>>, vector<16x1xi8>
    %c0_i8 = arith.constant 0 : i8
    %1 = vector.broadcast %c0_i8 : i8 to vector<16x1xi8>
    %2 = arith.cmpi ne, %0, %1 : vector<16x1xi8>
    %c0_1 = arith.constant 0 : index
    %c0_2 = arith.constant 0 : index
    %3 = vector.load %arg3[%c0_1, %c0_2] : memref<1x32xf32, #tpu.memory_space<vmem>>, vector<1x32xf32>
    %c0_3 = arith.constant 0 : index
    %c0_4 = arith.constant 0 : index
    %4 = vector.load %arg1[%c0_3, %c0_4] : memref<16x32xf32, #tpu.memory_space<vmem>>, vector<16x32xf32>
    %5 = vector.shape_cast %2 : vector<16x1xi1> to vector<16x1xi1>
    %6 = vector.broadcast %5 : vector<16x1xi1> to vector<16x32xi1>
    %7 = vector.shape_cast %3 : vector<1x32xf32> to vector<1x32xf32>
    %8 = vector.broadcast %7 : vector<1x32xf32> to vector<16x32xf32>
    %9 = arith.select %6, %8, %4 : vector<16x32xi1>, vector<16x32xf32>
    %c0_5 = arith.constant 0 : index
    %c0_6 = arith.constant 0 : index
    %10 = vector.load %arg4[%c0_5, %c0_6] : memref<16x32xf32, #tpu.memory_space<vmem>>, vector<16x32xf32>
    tpu.vector_store %arg4[%c0_5, %c0_6], %9 {strides = array<i32>} : memref<16x32xf32, #tpu.memory_space<vmem>>, vector<16x32xf32>,
    return
  }
  func.func @transform_0(%arg0: i32) -> (i32, i32) {
    %c0_i32 = arith.constant 0 : i32
    %c0_i32_0 = arith.constant 0 : i32
    return %arg0, %c0_i32 : i32, i32
  }
  func.func @transform_1(%arg0: i32) -> (i32, i32) {
    %c0_i32 = arith.constant 0 : i32
    %c0_i32_0 = arith.constant 0 : i32
    return %arg0, %c0_i32 : i32, i32
  }
  func.func @transform_2(%arg0: i32) -> (i32, i32) {
    %c0_i32 = arith.constant 0 : i32
    %c0_i32_0 = arith.constant 0 : i32
    %c0_i32_1 = arith.constant 0 : i32
    return %c0_i32, %c0_i32_0 : i32, i32
  }
  func.func @transform_3(%arg0: i32) -> (i32, i32) {
    %c0_i32 = arith.constant 0 : i32
    %c0_i32_0 = arith.constant 0 : i32
    return %arg0, %c0_i32 : i32, i32
  }
}

</mosaic_0001>

<bundles_post_ra>
// kernel: tpu_custom_call.1
= control target key start
LH: loop header
LB: loop body
LE: loop exit
PB: predicated region body
PF: predicated region fallthrough
CT: control target
= control target key end

     0   :  { %8 = vsyncpa [#allocation3], 0  ;;  %s179_s0 = inlined_call_operand.hbm [shape: f32[16,32], index: 0, kind: input, shape index: {}]   ;;  %s180_s1 = inlined_call_operand.vmem [shape: s8[16,1], index: 1, kind: input, shape index: {}]   ;;  %s181_s2 = inlined_call_operand.vmem [shape: f32[1,32], index: 2, kind: input, shape index: {}]   ;;  %s182_s3 = inlined_call_operand.hbm [shape: f32[16,32], index: 3, kind: output, shape index: {}]  }
   0x1   :  { %9 = vsyncpa [#allocation4], 0  ;;  %s133_s12 = smov [#allocation2]  }
   0x2   :  { %s15_s13 = sshll.u32 %s133_s12, 4  ;;  %s16_s13 = int_to_ptr.vmem [resolvable:$true] %s15_s13 }
   0x3   :  { %s97_s14 = scalar_lea.vmem %s16_s13, 256  ;;  %p102_p1 = scmp.lt.s32.totalorder %s16_s13, %s16_s13 }
   0x4   :  { %p98_p0 = scmp.ne.s32.totalorder %s16_s13, %s97_s14  ;;  %p103_p2 = scmp.lt.s32.totalorder %s97_s14, %s97_s14 }
   0x6   :  { %p104_p3 = por %p103_p2, %p102_p1 }
   0x8   :  { %p105_p4 = pnand %p104_p3, %p98_p0 }
   0xa   :  { %108 = shalt.err (!%p105_p4)
}
   0xb   :  { %s134_s15 = smov 128   ;;  %s135_s16 = smov 8  }
   0xc   :  { %21 = dma.hbm_to_vmem [thread:$0]  %s179_s0, 256, %s16_s13, [#allocation3], %s134_s15, %s134_s15, %s135_s16  }
   0xd   :  { %129 = dma.done.wait [#allocation3], 256  }
   0xe   :  { %130 = vsyncadd [#allocation3], 4294967040  ;;  %v136_v0 = vmov 0   ;;  %v31_v1 = vld [vmem:[%s180_s1] sm:$0x3]  ;;  %vm62_vm4 = vcmask 261120  }
   0xf   :  { %88 = vset.pattern.permute.xlu0 %v136_v0  ;;  %v32_v2 = vld [vmem:[%s180_s1 + $0x2] sm:$0x3]  ;;  %vm33_vm0 = vnez %v31_v1  ;;  %v82_v9 = vld [vmem:[%s181_s2] ss:$0 sm:$0xff]  ;;  %s137_s1 = smov [#allocation5]   ;;  %v37_v13 = vld [vmem:[#allocation2 + $0x8] sm:$0xff] }
  0x10   :  { %vm34_vm1 = vnez %v32_v2  ;;  %v38_v3 = vsel %vm33_vm0, 16843009, %v136_v0  ;;  %v36_v10 = vld [vmem:[#allocation2] sm:$0xff]  ;;  %s70_s24 = sshll.u32 %s137_s1, 4  ;;  %s71_s24 = int_to_ptr.vmem [resolvable:$true] %s70_s24 }
  0x11   :  { %v39_v4 = vsel %vm34_vm1, 16843009, %v136_v0  ;;  %v40_v5 = vunpack.c.0.s8 %v38_v3  ;;  %s109_s25 = scalar_lea.vmem %s71_s24, 256  ;;  %p114_p6 = scmp.lt.s32.totalorder %s71_s24, %s71_s24 }
  0x12   :  { %v41_v6 = vunpack.c.0.s8 %v39_v4  ;;  %p110_p5 = scmp.ne.s32.totalorder %s71_s24, %s109_s25  ;;  %p115_p7 = scmp.lt.s32.totalorder %s109_s25, %s109_s25 }
  0x13   :  { %vm42_vm2 = vcmp.ne.s32.totalorder %v40_v5, 0 }
  0x14   :  { %vm43_vm3 = vcmp.ne.s32.totalorder %v41_v6, 0  ;;  %v44_v7 = vsel %vm42_vm2, 1, %v136_v0  ;;  %p116_p8 = por %p115_p7, %p114_p6 }
  0x15   :  { %47 = vperm.xlu0 %88, %v44_v7   ;;  %v45_v8 = vsel %vm43_vm3, 1, %v136_v0 }
  0x16   :  { %p117_p9 = pnand %p116_p8, %p110_p5 }
  0x19   :  { %50 = vperm.xlu0 %88, %v45_v8  }
  0x90   :  { %v48_v11 = vpop.permute.xlu0 %47 }
  0x91   :  { %vm52_vm5 = vcmp.eq.s32.totalorder %v48_v11, 1 }
  0x92   :  { %v60_v12 = vsel %vm52_vm5, %v82_v9, %v36_v10 }
  0x93   :  { %63 = vst.msk [vmem:[#allocation5] sm:$0xff] %vm62_vm4, %v60_v12 }
  0x94   :  { %v51_v14 = vpop.permute.xlu0 %50 }
  0x95   :  { %vm53_vm6 = vcmp.eq.s32.totalorder %v51_v14, 1 }
  0x96   :  { %v61_v15 = vsel %vm53_vm6, %v82_v9, %v37_v13 }
  0x97   :  { %64 = vst.msk [vmem:[#allocation5 + $0x8] sm:$0xff] %vm62_vm4, %v61_v15 }
  0x98   :  { %120 = shalt.err (!%p117_p9)
}
  0x99   :  { %76 = dma.vmem_to_hbm [thread:$0]  %s71_s24, 256, %s182_s3, [#allocation4], %s134_s15, %s134_s15, %s135_s16  }
  0x9a   :  { %131 = dma.done.wait [#allocation4], 256  }
  0x9b   :  { %132 = vsyncadd [#allocation4], 4294967040 }
  0x9c   :  { %80 = vsyncpa [#allocation3], 1 }
  0x9d   :  { %81 = vsyncpa [#allocation4], 1 }

</bundles_post_ra>
